<compile_context>
chip_gen: v7x
topology: tpu7x:2x2x1
jax: 0.10.0
libtpu: 0.0.40
codegen_flags: <defaults>
</compile_context>

<pallas_src>
import functools

import jax
import jax.numpy as jnp
from jax.experimental import pallas as pl
from jax.experimental.pallas import tpu as pltpu


# ---------------------------------------------------------------------------
# VMEM sizing helpers.
# ---------------------------------------------------------------------------

def _vmem_capacity_bytes():
    """Physical VMEM per TensorCore; conservative default if the query fails."""
    try:
        info = pltpu.get_tpu_info()
        cap = getattr(info, "vmem_capacity_bytes", None)
        if cap:
            return int(cap)
    except Exception:  # defensive: unusual runtimes / emulators
        pass
    return 64 * 1024 * 1024  # assume the smallest (v7x-class) part


def _vmem_budget_and_limit():
    """(per-step footprint budget, explicit vmem_limit_bytes) per generation."""
    cap = _vmem_capacity_bytes()
    if cap >= 96 * 1024 * 1024:          # v5e / v6e class: 128 MiB per core
        return 40 * 1024 * 1024, 96 * 1024 * 1024
    # v7x class (64 MiB per TensorCore) or unknown: stay well clear.
    return 24 * 1024 * 1024, min(48 * 1024 * 1024, int(cap * 3 // 4))


def _padded_tile_bytes(sub, lane, itemsize):
    """VMEM bytes of a (sub, lane) tile after (8/16/32, 128) tiling padding."""
    pack = max(8, 32 // itemsize)            # sublanes per native tile
    sub_p = ((sub + pack - 1) // pack) * pack
    lane_p = ((lane + 127) // 128) * 128
    return sub_p * lane_p * itemsize


def _fused_footprint_bytes(c_blk, hw, itemsize):
    """Per-step VMEM: double-buffered in + out blocks plus f32 temporaries."""
    io = 4 * _padded_tile_bytes(c_blk, hw, itemsize)      # 2x in + 2x out
    f32_tmp = 3 * _padded_tile_bytes(c_blk, hw, 4)        # in-kernel f32 copies
    return io + f32_tmp


def _pick_fused_channel_block(N, C, G, Cg, hw, itemsize, budget):
    """Largest per-step channel block (whole groups) that fits the budget.

    Prefers choices that leave >= 2 total grid steps so both v7x TensorCores
    get work under dimension_semantics="parallel".
    """
    feasible = []
    for d in range(1, G + 1):
        if G % d:
            continue
        c_blk = d * Cg
        # (8,128) rule: second-minor block dim must be a multiple of 8 or
        # equal the full array dim.
        if c_blk != C and c_blk % 8:
            continue
        if _fused_footprint_bytes(c_blk, hw, itemsize) <= budget:
            feasible.append(c_blk)
    if not feasible:
        return None
    multi_step = [c for c in feasible if N * (C // c) >= 2]
    return max(multi_step) if multi_step else max(feasible)


def _pick_apply_hw_block(c_blk, HW, itemsize, budget):
    """Lane block (multiple of 128, or full HW) for the chunked apply kernel."""
    per_chunk = (4 * _padded_tile_bytes(c_blk, 128, itemsize)
                 + 2 * _padded_tile_bytes(c_blk, 128, 4))
    n_chunks = max(1, int(budget // per_chunk))
    hw_blk = n_chunks * 128
    return HW if hw_blk >= HW else hw_blk


# ---------------------------------------------------------------------------
# Kernels.
# ---------------------------------------------------------------------------

def _group_norm_fused_kernel(x_ref, w_ref, b_ref, o_ref, *, eps, cg):
    """Normalize c_blk = g_blk * cg whole groups of one sample in one step."""
    _, c_blk, hw = x_ref.shape
    g_blk = c_blk // cg
    n = cg * hw                                   # elements per group (static)

    xf = x_ref[...][0].astype(jnp.float32)        # (c_blk, hw) f32 working copy

    # Single pass over the block: per-channel sum and sum of squares (XLU).
    ch_sum = jnp.sum(xf, axis=1, keepdims=True)           # (c_blk, 1)
    ch_ssq = jnp.sum(xf * xf, axis=1, keepdims=True)      # (c_blk, 1)

    # 0/1 channel->group membership mask: group g owns the contiguous channel
    # range [g*cg, (g+1)*cg).  Built from iota compares (VPU, tiny).
    ch_id = jax.lax.broadcasted_iota(jnp.int32, (c_blk, g_blk), 0)
    grp_id = jax.lax.broadcasted_iota(jnp.int32, (c_blk, g_blk), 1)
    member = jnp.logical_and(ch_id >= grp_id * cg,
                             ch_id < (grp_id + 1) * cg).astype(jnp.float32)

    # Exact f32 regroup of the per-channel sums (mask-multiply + reduce).
    g_sum = jnp.sum(member * ch_sum, axis=0, keepdims=True)   # (1, g_blk)
    g_ssq = jnp.sum(member * ch_ssq, axis=0, keepdims=True)   # (1, g_blk)

    mean_g = g_sum / n
    # Unbiased variance (torch.Tensor.var default, as used by the module).
    # Single-pass form; f32 accumulation keeps cancellation error negligible
    # for normalization-scale inputs.
    var_g = (g_ssq - g_sum * mean_g) / (n - 1)
    inv_g = jax.lax.rsqrt(var_g + eps)                         # (1, g_blk)

    # Scatter group stats back to channels (each row has exactly one 1).
    mean_c = jnp.sum(member * mean_g, axis=1, keepdims=True)   # (c_blk, 1)
    inv_c = jnp.sum(member * inv_g, axis=1, keepdims=True)     # (c_blk, 1)

    # Fold the mean and per-channel affine into one fused multiply-add so the
    # big block is touched exactly once more (no `diff` temporary).
    w = w_ref[...].astype(jnp.float32)                         # (c_blk, 1)
    b = b_ref[...].astype(jnp.float32)
    scale = inv_c * w
    shift = b - mean_c * scale

    o_ref[...] = (xf * scale + shift).astype(o_ref.dtype)[None]


def _group_norm_apply_kernel(x_ref, scale_ref, shift_ref, o_ref):
    """Elementwise y = x * scale[c] + shift[c] (stats precomputed)."""
    xf = x_ref[...].astype(jnp.float32)
    o_ref[...] = (xf * scale_ref[...] + shift_ref[...]).astype(o_ref.dtype)


def _group_norm_fallback(x_r, w_r, b_r, *, G, Cg, eps, budget, vmem_limit):
    """Groups too large for one VMEM block: one XLA stats pass, then a Pallas
    apply kernel chunked over channels and H*W (keeps pipelining and avoids
    the previous compile-time VMEM blow-up)."""
    # TODO(synk): replace the XLA reduction with a Pallas stats kernel that
    # accumulates sum/sumsq over an "arbitrary" H*W-chunk grid axis.
    N, C, HW = x_r.shape
    xg = x_r.reshape(N, G, Cg * HW).astype(jnp.float32)
    mean = jnp.mean(xg, axis=-1)                       # (N, G)
    var = jnp.var(xg, axis=-1, ddof=1)                 # unbiased (torch .var())
    inv = jax.lax.rsqrt(var + eps)

    w = w_r.reshape(1, C).astype(jnp.float32)
    b = b_r.reshape(1, C).astype(jnp.float32)
    mean_c = jnp.repeat(mean, Cg, axis=1)              # (N, C)
    inv_c = jnp.repeat(inv, Cg, axis=1)
    scale = (inv_c * w)[..., None]                     # (N, C, 1) f32
    shift = (b - mean_c * inv_c * w)[..., None]        # (N, C, 1) f32

    itemsize = x_r.dtype.itemsize
    c_blk = C if C <= 64 else 64                       # 64 % 8 == 0
    hw_blk = _pick_apply_hw_block(c_blk, HW, itemsize, budget)

    return pl.pallas_call(
        _group_norm_apply_kernel,
        out_shape=jax.ShapeDtypeStruct((N, C, HW), x_r.dtype),
        grid=(N, pl.cdiv(C, c_blk), pl.cdiv(HW, hw_blk)),
        in_specs=[
            pl.BlockSpec((1, c_blk, hw_blk), lambda n, c, s: (n, c, s)),
            pl.BlockSpec((1, c_blk, 1), lambda n, c, s: (n, c, 0)),
            pl.BlockSpec((1, c_blk, 1), lambda n, c, s: (n, c, 0)),
        ],
        out_specs=pl.BlockSpec((1, c_blk, hw_blk), lambda n, c, s: (n, c, s)),
        compiler_params=pltpu.CompilerParams(
            dimension_semantics=("parallel", "parallel", "parallel"),
            vmem_limit_bytes=vmem_limit,
        ),
    )(x_r, scale, shift)


# ---------------------------------------------------------------------------
# Public wrapper.
# ---------------------------------------------------------------------------

def group_norm(x, weight, bias, *, num_groups, eps=1e-5, block_budget_bytes=None):
    """x: (N, C, H, W); weight/bias with C elements (e.g. (1, C, 1, 1)).

    Matches the PyTorch module's forward (unbiased per-group variance, then
    per-channel affine).  `block_budget_bytes` is a test/tuning hook that
    overrides the per-step VMEM footprint budget.
    """
    N, C, H, W = x.shape
    G = num_groups
    assert C % G == 0, "C must be divisible by num_groups"
    Cg = C // G
    HW = H * W
    assert Cg * HW > 1, "group must have more than one element (unbiased var)"

    # Free, contiguous reshapes: channels dense on sublanes, H*W on lanes.
    # TODO(synk): when HW % 128 != 0 and N is large, folding Cg*HW onto the
    # lane axis (with pre-expanded per-lane affine) would recover the lane
    # padding; not done by default because it costs an extra C*HW HBM read.
    x_r = x.reshape(N, C, HW)
    w_r = jnp.asarray(weight).reshape(C, 1)
    b_r = jnp.asarray(bias).reshape(C, 1)

    budget, vmem_limit = _vmem_budget_and_limit()
    if block_budget_bytes is not None:
        budget = int(block_budget_bytes)

    itemsize = x.dtype.itemsize
    c_blk = _pick_fused_channel_block(N, C, G, Cg, HW, itemsize, budget)

    if c_blk is None:
        out = _group_norm_fallback(x_r, w_r, b_r, G=G, Cg=Cg, eps=eps,
                                   budget=budget, vmem_limit=vmem_limit)
        return out.reshape(N, C, H, W)

    kernel = functools.partial(_group_norm_fused_kernel, eps=eps, cg=Cg)
    out = pl.pallas_call(
        kernel,
        out_shape=jax.ShapeDtypeStruct((N, C, HW), x.dtype),
        grid=(N, C // c_blk),
        in_specs=[
            pl.BlockSpec((1, c_blk, HW), lambda n, c: (n, c, 0)),
            pl.BlockSpec((c_blk, 1), lambda n, c: (c, 0)),
            pl.BlockSpec((c_blk, 1), lambda n, c: (c, 0)),
        ],
        out_specs=pl.BlockSpec((1, c_blk, HW), lambda n, c: (n, c, 0)),
        compiler_params=pltpu.CompilerParams(
            dimension_semantics=("parallel", "parallel"),
            vmem_limit_bytes=vmem_limit,
        ),
    )(x_r, w_r, b_r)
    return out.reshape(N, C, H, W)


# ---------------------------------------------------------------------------
# Reference + self-test.
# ---------------------------------------------------------------------------

def _reference_group_norm(x, weight, bias, num_groups, eps=1e-5):
    N, C, H, W = x.shape
    xr = x.reshape(N, num_groups, -1).astype(jnp.float32)
    mean = xr.mean(-1, keepdims=True)
    var = xr.var(-1, keepdims=True, ddof=1)           # unbiased, like torch .var()
    xn = ((xr - mean) * jax.lax.rsqrt(var + eps)).reshape(N, C, H, W)
    w = jnp.asarray(weight).reshape(1, C, 1, 1).astype(jnp.float32)
    b = jnp.asarray(bias).reshape(1, C, 1, 1).astype(jnp.float32)
    return (xn * w + b).astype(x.dtype)


if __name__ == "__main__":
    k = jax.random.split(jax.random.PRNGKey(0), 6)

    def check(name, x, w, b, G, atol, rtol, **kw):
        out = jax.block_until_ready(group_norm(x, w, b, num_groups=G, **kw))
        ref = _reference_group_norm(x, w, b, G)
        assert out.shape == x.shape and out.dtype == x.dtype, name
        ok = jnp.allclose(out.astype(jnp.float32), ref.astype(jnp.float32),
                          atol=atol, rtol=rtol)
        assert ok, f"{name}: mismatch vs reference"

    # 1) Module-like small shape (fp32, fused single-pass Pallas path).
    N, C, H, W, G = 2, 4, 16, 16, 2
    x = jax.random.normal(k[0], (N, C, H, W), dtype=jnp.float32)
    w = 1.0 + 0.1 * jax.random.normal(k[1], (1, C, 1, 1), dtype=jnp.float32)
    b = 0.1 * jax.random.normal(k[2], (1, C, 1, 1), dtype=jnp.float32)
    check("fp32 fused", x, w, b, G, atol=1e-4, rtol=1e-4)

    # 2) Same inputs through the chunked-apply fallback (forced via the budget
    #    hook) to exercise the large-group path.
    check("fallback", x, w, b, G, atol=1e-4, rtol=1e-4, block_budget_bytes=1)

    # 3) bf16 activations, more channels/groups (dense sublane packing).
    xb = jax.random.normal(k[3], (2, 32, 8, 8), dtype=jnp.bfloat16)
    wb = 1.0 + 0.1 * jax.random.normal(k[4], (1, 32, 1, 1), dtype=jnp.float32)
    bb = 0.1 * jax.random.normal(k[5], (1, 32, 1, 1), dtype=jnp.float32)
    check("bf16 fused", xb, wb, bb, 8, atol=3e-2, rtol=3e-2)

    # 4) H*W not a multiple of 128 (lane-padded full-dim block), N=1.
    x3 = jax.random.normal(k[0], (1, 8, 10, 10), dtype=jnp.float32)
    w3 = jnp.ones((1, 8, 1, 1), dtype=jnp.float32)
    b3 = jnp.zeros((1, 8, 1, 1), dtype=jnp.float32)
    check("odd HW", x3, w3, b3, 4, atol=1e-4, rtol=1e-4)

    print("KERNEL_OK")
</pallas_src>

<mosaic_0001>
module attributes {stable_mosaic.version = 11 : i64} {
  func.func @_group_norm_fused_kernel(%arg0: i32, %arg1: i32, %arg2: memref<1x4x256xf32, #tpu.memory_space<vmem>>, %arg3: memref<4x1xf32, #tpu.memory_space<vmem>>, %arg4: memref<4x1xf32, #tpu.memory_space<vmem>>, %arg5: memref<1x4x256xf32, #tpu.memory_space<vmem>>) attributes {dimension_semantics = [#tpu.dimension_semantics<parallel>, #tpu.dimension_semantics<parallel>], iteration_bounds = array<i64: 2, 1>, scalar_prefetch = 0 : i64, scratch_operands = 0 : i64, tpu.core_type = #tpu.core_type<tc>, window_params = [{transform_indices = @transform_0, window_bounds = array<i64: 1, 4, 256>}, {transform_indices = @transform_1, window_bounds = array<i64: 4, 1>}, {transform_indices = @transform_2, window_bounds = array<i64: 4, 1>}, {transform_indices = @transform_3, window_bounds = array<i64: 1, 4, 256>}]} {
    %c0 = arith.constant 0 : index
    %c0_0 = arith.constant 0 : index
    %c0_1 = arith.constant 0 : index
    %0 = vector.load %arg2[%c0, %c0_0, %c0_1] : memref<1x4x256xf32, #tpu.memory_space<vmem>>, vector<1x4x256xf32>
    %1 = vector.shape_cast %0 : vector<1x4x256xf32> to vector<4x256xf32>
    %cst = arith.constant dense<0.000000e+00> : vector<4xf32>
    %2 = vector.multi_reduction <add>, %1, %cst [1] : vector<4x256xf32> to vector<4xf32>
    %3 = vector.shape_cast %2 : vector<4xf32> to vector<4x1xf32>
    %4 = arith.mulf %1, %1 : vector<4x256xf32>
    %cst_2 = arith.constant dense<0.000000e+00> : vector<4xf32>
    %5 = vector.multi_reduction <add>, %4, %cst_2 [1] : vector<4x256xf32> to vector<4xf32>
    %6 = vector.shape_cast %5 : vector<4xf32> to vector<4x1xf32>
    %7 = tpu.iota {dimensions = array<i32: 0>} : vector<4x2xi32>
    %8 = tpu.iota {dimensions = array<i32: 1>} : vector<4x2xi32>
    %c2_i32 = arith.constant 2 : i32
    %9 = vector.broadcast %c2_i32 : i32 to vector<4x2xi32>
    %10 = arith.muli %8, %9 : vector<4x2xi32>
    %11 = arith.cmpi sge, %7, %10 : vector<4x2xi32>
    %c1_i32 = arith.constant 1 : i32
    %12 = vector.broadcast %c1_i32 : i32 to vector<4x2xi32>
    %13 = arith.addi %8, %12 : vector<4x2xi32>
    %c2_i32_3 = arith.constant 2 : i32
    %14 = vector.broadcast %c2_i32_3 : i32 to vector<4x2xi32>
    %15 = arith.muli %13, %14 : vector<4x2xi32>
    %16 = arith.cmpi slt, %7, %15 : vector<4x2xi32>
    %17 = arith.andi %11, %16 : vector<4x2xi1>
    %18 = arith.extui %17 : vector<4x2xi1> to vector<4x2xi32>
    %19 = arith.sitofp %18 : vector<4x2xi32> to vector<4x2xf32>
    %20 = vector.broadcast %3 : vector<4x1xf32> to vector<4x2xf32>
    %21 = arith.mulf %19, %20 : vector<4x2xf32>
    %cst_4 = arith.constant dense<0.000000e+00> : vector<2xf32>
    %22 = vector.multi_reduction <add>, %21, %cst_4 [0] : vector<4x2xf32> to vector<2xf32>
    %23 = vector.shape_cast %22 : vector<2xf32> to vector<1x2xf32>
    %24 = vector.broadcast %6 : vector<4x1xf32> to vector<4x2xf32>
    %25 = arith.mulf %19, %24 : vector<4x2xf32>
    %cst_5 = arith.constant dense<0.000000e+00> : vector<2xf32>
    %26 = vector.multi_reduction <add>, %25, %cst_5 [0] : vector<4x2xf32> to vector<2xf32>
    %27 = vector.shape_cast %26 : vector<2xf32> to vector<1x2xf32>
    %cst_6 = arith.constant 5.120000e+02 : f32
    %28 = vector.broadcast %cst_6 : f32 to vector<1x2xf32>
    %29 = arith.divf %23, %28 : vector<1x2xf32>
    %30 = arith.mulf %23, %29 : vector<1x2xf32>
    %31 = arith.subf %27, %30 : vector<1x2xf32>
    %cst_7 = arith.constant 5.110000e+02 : f32
    %32 = vector.broadcast %cst_7 : f32 to vector<1x2xf32>
    %33 = arith.divf %31, %32 : vector<1x2xf32>
    %cst_8 = arith.constant 9.99999974E-6 : f32
    %34 = vector.broadcast %cst_8 : f32 to vector<1x2xf32>
    %35 = arith.addf %33, %34 : vector<1x2xf32>
    %36 = math.rsqrt %35 : vector<1x2xf32>
    %37 = vector.broadcast %29 : vector<1x2xf32> to vector<4x2xf32>
    %38 = arith.mulf %19, %37 : vector<4x2xf32>
    %cst_9 = arith.constant dense<0.000000e+00> : vector<4xf32>
    %39 = vector.multi_reduction <add>, %38, %cst_9 [1] : vector<4x2xf32> to vector<4xf32>
    %40 = vector.shape_cast %39 : vector<4xf32> to vector<4x1xf32>
    %41 = vector.broadcast %36 : vector<1x2xf32> to vector<4x2xf32>
    %42 = arith.mulf %19, %41 : vector<4x2xf32>
    %cst_10 = arith.constant dense<0.000000e+00> : vector<4xf32>
    %43 = vector.multi_reduction <add>, %42, %cst_10 [1] : vector<4x2xf32> to vector<4xf32>
    %44 = vector.shape_cast %43 : vector<4xf32> to vector<4x1xf32>
    %c0_11 = arith.constant 0 : index
    %c0_12 = arith.constant 0 : index
    %45 = vector.load %arg3[%c0_11, %c0_12] : memref<4x1xf32, #tpu.memory_space<vmem>>, vector<4x1xf32>
    %c0_13 = arith.constant 0 : index
    %c0_14 = arith.constant 0 : index
    %46 = vector.load %arg4[%c0_13, %c0_14] : memref<4x1xf32, #tpu.memory_space<vmem>>, vector<4x1xf32>
    %47 = arith.mulf %44, %45 : vector<4x1xf32>
    %48 = arith.mulf %40, %47 : vector<4x1xf32>
    %49 = arith.subf %46, %48 : vector<4x1xf32>
    %50 = vector.broadcast %47 : vector<4x1xf32> to vector<4x256xf32>
    %51 = arith.mulf %1, %50 : vector<4x256xf32>
    %52 = vector.broadcast %49 : vector<4x1xf32> to vector<4x256xf32>
    %53 = arith.addf %51, %52 : vector<4x256xf32>
    %54 = vector.shape_cast %53 : vector<4x256xf32> to vector<1x4x256xf32>
    %c0_15 = arith.constant 0 : index
    %c0_16 = arith.constant 0 : index
    %c0_17 = arith.constant 0 : index
    %55 = vector.load %arg5[%c0_15, %c0_16, %c0_17] : memref<1x4x256xf32, #tpu.memory_space<vmem>>, vector<1x4x256xf32>
    tpu.vector_store %arg5[%c0_15, %c0_16, %c0_17], %54 {strides = array<i32>} : memref<1x4x256xf32, #tpu.memory_space<vmem>>, vector<1x4x256xf32>,
    return
  }
  func.func @transform_0(%arg0: i32, %arg1: i32) -> (i32, i32, i32) {
    %c0_i32 = arith.constant 0 : i32
    %c0_i32_0 = arith.constant 0 : i32
    return %arg0, %arg1, %c0_i32 : i32, i32, i32
  }
  func.func @transform_1(%arg0: i32, %arg1: i32) -> (i32, i32) {
    %c0_i32 = arith.constant 0 : i32
    %c0_i32_0 = arith.constant 0 : i32
    return %arg1, %c0_i32 : i32, i32
  }
  func.func @transform_2(%arg0: i32, %arg1: i32) -> (i32, i32) {
    %c0_i32 = arith.constant 0 : i32
    %c0_i32_0 = arith.constant 0 : i32
    return %arg1, %c0_i32 : i32, i32
  }
  func.func @transform_3(%arg0: i32, %arg1: i32) -> (i32, i32, i32) {
    %c0_i32 = arith.constant 0 : i32
    %c0_i32_0 = arith.constant 0 : i32
    return %arg0, %arg1, %c0_i32 : i32, i32, i32
  }
}

</mosaic_0001>

<bundles_post_ra>
// kernel: tpu_custom_call.1
= control target key start
LH: loop header
LB: loop body
LE: loop exit
PB: predicated region body
PF: predicated region fallthrough
CT: control target
= control target key end

     0   :  { %8 = vsyncpa [#allocation3], 0  ;;  %s889_s0 = inlined_call_operand.hbm [shape: f32[2,4,256], index: 0, kind: input, shape index: {}]   ;;  %s890_s1 = inlined_call_operand.vmem [shape: f32[4,1], index: 1, kind: input, shape index: {}]   ;;  %s891_s2 = inlined_call_operand.vmem [shape: f32[4,1], index: 2, kind: input, shape index: {}]   ;;  %s892_s3 = inlined_call_operand.hbm [shape: f32[2,4,256], index: 3, kind: output, shape index: {}]  }
   0x1   :  { %10 = vsyncpa [#allocation3 + $0x1], 0 }
   0x2   :  { %11 = vsyncpa [#allocation4], 0 }
   0x3   :  { %13 = vsyncpa [#allocation4 + $0x1], 0  ;;  %s695_s12 = smov 0   ;;  %s697_s13 = smov 0  }
   0x4   :  { %s699_s14 = smov 0   ;;  %s701_s15 = smov 0  }
   0x5   :  { %s703_s16 = smov 0   ;;  %s705_s17 = smov 0  }
   0x6 LB: > { %s466_s18 = sadd.s32 4294967295, %s668_s17   ;;  %s467_s19 = sadd.s32 4294967294, %s668_s17   ;;  %s668_s17 = sphi %s705_s17, %s19_s17   ;;  %s664_s16 = sphi %s703_s16, %s908_s16   ;;  %s660_s15 = sphi %s701_s15, %s907_s15   ;;  %s656_s14 = sphi %s699_s14, %s906_s14   ;;  %s652_s13 = sphi %s697_s13, %s905_s13   ;;  %s648_s12 = sphi %s695_s12, %s904_s12  }
   0x7   : > { %s31_s20 = sadd.s32 1, %s664_s16  ;;  %s40_s21 = sadd.s32 1, %s656_s14 }
   0x8   : > { %p33_p0 = scmp.ge.s32.totalorder %s31_s20, 2  ;;  %p47_p1 = scmp.ne.s32.totalorder %s656_s14, %s652_s13 }
   0x9   : > { %p48_p2 = scmp.eq.s32.totalorder %s668_s17, 0  ;;  %p53_p3 = scmp.ne.s32.totalorder %s652_s13, %s648_s12 }
   0xa   : > { %s910_s20 = smov (%p33_p0, %s31_s20), 0  ;;  %p54_p5 = scmp.eq.s32.totalorder %s466_s18, 0 }
   0xb   : > { %p736_p4 = por %p48_p2, %p47_p1  ;;  %s35_s23 = ssub.s32 %s664_s16, %s910_s20 }
   0xc   : > { %p131_p6 = scmp.eq.s32.totalorder %s466_s18, 1  ;;  %p38_p7 = scmp.eq.s32.totalorder %s35_s23, 0 }
   0xd   : > { %p742_p8 = por %p54_p5, %p53_p3  ;;  %p137_p10 = scmp.eq.s32.totalorder %s467_s19, 1 }
   0xe   : > { %p746_p9 = por %p131_p6, %p47_p1  ;;  %p498_p13 = scmp.lt.s32.totalorder %s668_s17, 2 }
   0xf   : > { %s751_s26 = scalar_select %p38_p7, %s656_s14, %s40_s21  }
  0x10   : > { %s896_s25 = scalar_select %p746_p9, 1, 0 }
  0x11   : > { %p753_p11 = por %p137_p10, %p53_p3  ;;  %s171_s28 = sand.u32 1, %s656_s14  }
  0x12   : > { %s472_s29 = sshll.u32 %s171_s28, 3  ;;  %s484_s30 = sshll.u32 %s664_s16, 7 }
  0x13   : > { %s897_s27 = scalar_select %p753_p11, 1, 0 }
  0x14   : > { %s764_s6 = scalar_lea.hbm %s889_s0, %s484_s30  ;;  %s175_s7 = scalar_lea.vmem [#allocation2], %s472_s29 }
  0x15   : > { %s185_s8 = sshll.u32 %s175_s7, 4  ;;  %p770_p0 = pnand %p498_p13, %p736_p4  ;;  %s766_s8 = int_to_ptr.vmem [resolvable:$true] %s185_s8 }
  0x16   : > { %s172_s10 = scalar_lea.sflag [#allocation3], %s171_s28  ;;  %s556_s11 = scalar_lea.hbm %s764_s6, 128 }
  0x17   : > { %p557_p3 = scmp.ne.s32.totalorder %s764_s6, %s556_s11  ;;  %p558_p5 = pneg %p770_p0 }
  0x18   : > { %s561_s21 = scalar_lea.hbm %s889_s0, 256  ;;  %p562_p4 = scmp.lt.u32.totalorder %s764_s6, %s889_s0 }
  0x19   : > { %p559_p6 = pnand %p558_p5, %p557_p3  ;;  %p563_p10 = scmp.lt.u32.totalorder %s561_s21, %s556_s11 }
  0x1a   : > { %p565_p12 = scmp.lt.u32.totalorder %s556_s11, %s764_s6 }
  0x1b   : > { %p560_p7 = pneg %p559_p6  ;;  %p564_p13 = por %p563_p10, %p562_p4 }
  0x1d   : > { %p566_p1 = por %p565_p12, %p564_p13 }
  0x1f   : > { %p567_p2 = pnand %p566_p1, %p560_p7 }
  0x21   : > { %570 = shalt.err (!%p567_p2)
}
  0x22   : > { %s571_s28 = scalar_lea.vmem %s766_s8, 128  ;;  %s670_s29 = smov [#allocation2]  }
  0x23   : > { %p572_p3 = scmp.ne.s32.totalorder %s766_s8, %s571_s28  ;;  %s576_s30 = sshll.u32 %s670_s29, 4  ;;  %s577_s30 = int_to_ptr.vmem [resolvable:$false] %s576_s30 }
  0x24   : > { %s578_s4 = scalar_lea.vmem %s577_s30, 256  ;;  %p579_p9 = scmp.lt.s32.totalorder %s766_s8, %s577_s30 }
  0x25   : > { %p574_p6 = pnand %p572_p3, %p558_p5  ;;  %p580_p4 = scmp.lt.s32.totalorder %s578_s4, %s571_s28 }
  0x27   : > { %p575_p11 = pneg %p574_p6  ;;  %p581_p10 = por %p580_p4, %p579_p9 }
  0x29   : > { %p582_p12 = pnand %p581_p10, %p575_p11 }
  0x2b   : > { %585 = shalt.err (!%p582_p12)
}
  0x2c   : > { %493 = dma.hbm_to_vmem [thread:$0]  (!%p770_p0), %s764_s6, 128, %s766_s8, %s172_s10  }
  0x2d   : > { %p899_p1 = scmp.lt.s32.totalorder %s668_s17, 3  ;;  %p900_p2 = scmp.ge.s32.totalorder %s668_s17, 1 }
  0x2f   : > { %p191_p5 = pnand %p900_p2, %p899_p1 }
  0x30   : > { %s806_s5 = sand.u32 (!%p191_p5), 1, %s652_s13  }
  0x31   : > { %194 = sbr.rel (%p191_p5) target bundleno = 540 (0x21c), region = 32  ;;  %s476_s7 = sshll.u32 (!%p191_p5), %s806_s5, 3 }
  0x32   : > { %s197_s11 = scalar_lea.sflag (!%p191_p5), [#allocation3], %s806_s5  ;;  %s200_s9 = scalar_lea.vmem (!%p191_p5), [#allocation2], %s476_s7 }
  0x38   : > { %639 = dma.done.wait (%p742_p8), %s197_s11, 128  }
  0x39   : > { %641 = vsyncadd (%p742_p8), %s197_s11, 4294967168  ;;  %vm243_vm0 = vcmask 1043456   ;;  %v816_v0 = vld [vmem:[%s200_s9] sm:$0xff]  ;;  %v258_v10 = vlaneseq  ;;  %v671_v16 = vmov 0.0   ;;  %vm271_vm4 = vcmask 11264   ;;  %s485_s18 = sshll.u32 %s660_s15, 7 }
  0x3a   : > { %v241_v1 = vcombine.high %v816_v0, %v816_v0  ;;  %v244_v2 = vsel %vm243_vm0, %v816_v0, 0.0  ;;  %v249_v3 = vmul.f32 %v816_v0, %v816_v0  ;;  %v672_v46 = vmov 0   ;;  %v303_v47 = vld [vmem:[%s890_s1] sm:$0xf]  ;;  %s230_s19 = scalar_lea.vmem [#allocation5], %s476_s7  ;;  %s840_s28 = scalar_lea.hbm %s892_s3, %s485_s18 }
  0x3b   : > { %v261_v11 = vand.u32 127, %v258_v10  ;;  %v259_v13 = vshrl.u32 %v258_v10, 7  ;;  %551 = vset.pattern.permute.xlu0 %v672_v46  ;;  %552 = vset.pattern.permute.xlu1 %v672_v46  ;;  %v304_v50 = vld [vmem:[%s891_s2] sm:$0xf]  ;;  %v673_v54 = vmov 839922192  }
  0x3c   : > { %v245_v4 = vsel %vm243_vm0, %v241_v1, 0.0  ;;  %v251_v5 = vcombine.high %v249_v3, %v249_v3  ;;  %v253_v6 = vsel %vm243_vm0, %v249_v3, 0.0  ;;  %v313_v55 = vunpack.c.l.s4 %v673_v54  ;;  %s352_s21 = sshll.u32 %s230_s19, 4  ;;  %s336_s29 = scalar_lea.sflag [#allocation4], %s806_s5  ;;  %s842_s21 = int_to_ptr.vmem [resolvable:$true] %s352_s21 }
  0x3d   : > { %v246_v7 = vadd.f32 %v245_v4, %v244_v2  ;;  %v264_v12 = vadd.s32 1, %v261_v11  ;;  %v262_v14 = vmul.u32 2, %v261_v11  ;;  %s586_s15 = scalar_lea.vmem %s842_s21, 128  ;;  %p901_p9 = scmp.ne.s32.totalorder %s896_s25, 0 }
  0x3e   : > { %v254_v8 = vsel %vm243_vm0, %v251_v5, 0.0  ;;  %v314_v56 = vunpack.c.0.s8 %v313_v55  ;;  %p587_p8 = scmp.ne.s32.totalorder %s842_s21, %s586_s15  ;;  %s674_s30 = smov [#allocation5]  }
  0x3f   : > { %247 = vadd.xlane.f32.xlu0 %v246_v7  ;;  %v255_v9 = vadd.f32 %v254_v8, %v253_v6  ;;  %v265_v15 = vmul.u32 2, %v264_v12  ;;  %vm263_vm1 = vcmp.ge.s32.totalorder %v259_v13, %v262_v14  ;;  %s590_s4 = sshll.u32 %s674_s30, 4  ;;  %s591_s4 = int_to_ptr.vmem [resolvable:$false] %s590_s4 }
  0x40   : > { %v317_v57 = vsub.s32 %v314_v56, %v259_v13  ;;  %p588_p11 = pnand %p587_p8, %p901_p9  ;;  %s592_s7 = scalar_lea.vmem %s591_s4, 256 }
  0x41   : > { %vm266_vm2 = vcmp.lt.s32.totalorder %v259_v13, %v265_v15  ;;  %p593_p7 = scmp.lt.s32.totalorder %s842_s21, %s591_s4  ;;  %p594_p13 = scmp.lt.s32.totalorder %s592_s7, %s586_s15 }
  0x42   : > { %vm267_vm3 = vmand %vm263_vm1, %vm266_vm2  ;;  %p589_p0 = pneg %p588_p11 }
  0x43   : > { %256 = vadd.xlane.f32.xlu0 %v255_v9  ;;  %v478_v17 = vsel %vm267_vm3, 1.0, %v671_v16  ;;  %p595_p3 = por %p594_p13, %p593_p7 }
  0x45   : > { %p596_p6 = pnand %p595_p3, %p589_p0 }
  0xcc   : > { %v248_v18 = vpop.xlane.xlu0 %247 }
  0xcd   : > { %v270_v19 = vmul.f32 %v478_v17, %v248_v18 }
  0xcf   : > { %v272_v20 = vsel %vm271_vm4, %v270_v19, 0.0 }
  0xd0   : > { %v273_v21 = vrot.slane %v272_v20, 4  ;;  %v257_v22 = vpop.xlane.xlu0 %256 }
  0xd1   : > { %v279_v23 = vmul.f32 %v478_v17, %v257_v22 }
  0xd2   : > { %v274_v24 = vadd.f32 %v273_v21, %v272_v20 }
  0xd3   : > { %v280_v25 = vsel %vm271_vm4, %v279_v23, 0.0 }
  0xd4   : > { %v275_v26 = vrot.slane %v274_v24, 2  ;;  %v281_v27 = vrot.slane %v280_v25, 4 }
  0xd6   : > { %v276_v28 = vadd.f32 %v275_v26, %v274_v24  ;;  %v282_v29 = vadd.f32 %v281_v27, %v280_v25 }
  0xd8   : > { %v277_v30 = vrot.slane %v276_v28, 1  ;;  %v283_v31 = vrot.slane %v282_v29, 2 }
  0xda   : > { %v278_v32 = vadd.f32 %v277_v30, %v276_v28  ;;  %v284_v33 = vadd.f32 %v283_v31, %v282_v29 }
  0xdc   : > { %v288_v34 = vmul.f32 0.001953125, %v278_v32  ;;  %v285_v35 = vrot.slane %v284_v33, 1 }
  0xde   : > { %v289_v36 = vmul.f32 %v288_v34, %v278_v32  ;;  %v286_v37 = vadd.f32 %v285_v35, %v284_v33  ;;  %v295_v44 = vmul.f32 %v478_v17, %v288_v34 }
  0xe0   : > { %v290_v38 = vsub.f32 %v286_v37, %v289_v36  ;;  %v296_v45 = vsel %vm271_vm4, %v295_v44, 0.0 }
  0xe2   : > { %v292_v39 = vmul.f32 0.0019569471, %v290_v38 }
  0xe4   : > { %v293_v40 = vadd.f32 1e-05, %v292_v39 }
  0xe6   : > { %554 = vrsqrt.f32 %v293_v40 }
  0xf0   : > { %v555_v41 = vpop.eup %554 }
  0xf1   : > { %v299_v42 = vmul.f32 %v555_v41, %v478_v17 }
  0xf3   : > { %v300_v43 = vsel %vm271_vm4, %v299_v42, 0.0 }
  0xf4   : > { %301 = vadd.xlane.f32.xlu1 %v300_v43 }
  0xf8   : > { %297 = vadd.xlane.f32.xlu1 %v296_v45 }
 0x181   : > { %v302_v48 = vpop.xlane.xlu1 %301 }
 0x182   : > { %v305_v49 = vmul.f32 %v303_v47, %v302_v48 }
 0x184   : > { %310 = vperm.xlu0 %551, %v305_v49  }
 0x185   : > { %v298_v51 = vpop.xlane.xlu1 %297 }
 0x186   : > { %v306_v52 = vmul.f32 %v305_v49, %v298_v51 }
 0x188   : > { %v307_v53 = vsub.f32 %v304_v50, %v306_v52 }
 0x18a   : > { %323 = vperm.xlu1 %552, %v307_v53  }
 0x203   : > { %v311_v58 = vpop.permute.xlu0 %310 }
 0x204   : > { %v318_v59 = vrot.slane %v311_v58, %v317_v57 }
 0x206   : > { %v320_v61 = vmul.f32 %v318_v59, %v816_v0 }
 0x209   : > { %v324_v60 = vpop.permute.xlu1 %323 }
 0x20a   : > { %v331_v62 = vrot.slane %v324_v60, %v317_v57 }
 0x20c   : > { %v333_v63 = vadd.f32 %v331_v62, %v320_v61 }
 0x20e   : > { %334 = vst [vmem:[%s230_s19] sm:$0xff] %v333_v63 }
 0x20f   : > { %599 = shalt.err (!%p596_p6)
}
 0x210   : > { %s600_s5 = scalar_lea.hbm %s840_s28, 128  ;;  %s604_s24 = scalar_lea.hbm %s892_s3, 256 }
 0x211   : > { %p601_p4 = scmp.ne.s32.totalorder %s840_s28, %s600_s5  ;;  %p605_p1 = scmp.lt.u32.totalorder %s840_s28, %s892_s3 }
 0x212   : > { %p606_p2 = scmp.lt.u32.totalorder %s604_s24, %s600_s5  ;;  %p608_p8 = scmp.lt.u32.totalorder %s600_s5, %s840_s28 }
 0x213   : > { %p602_p10 = pnand %p601_p4, %p901_p9 }
 0x214   : > { %p607_p5 = por %p606_p2, %p605_p1 }
 0x215   : > { %p603_p12 = pneg %p602_p10 }
 0x216   : > { %p609_p11 = por %p608_p8, %p607_p5 }
 0x218   : > { %p610_p0 = pnand %p609_p11, %p603_p12 }
 0x21a   : > { %613 = shalt.err (!%p610_p0)
}
 0x21b   : > { %488 = dma.vmem_to_hbm [thread:$0]  (%p901_p9), %s842_s21, 128, %s840_s28, %s336_s29  }
 0x21c PF: > { %s364_s10 = sand.u32 1, %s648_s12   ;;  %p902_p7 = scmp.ne.s32.totalorder %s897_s27, 0 }
 0x21d   : > { %p903_p13 = scmp.ge.s32.totalorder %s668_s17, 2  ;;  %s365_s18 = scalar_lea.sflag [#allocation4], %s364_s10 }
 0x21f   : > { %p495_p3 = pnand %p903_p13, %p902_p7 }
 0x221   : > { %643 = dma.done.wait (!%p495_p3), %s365_s18, 128  }
 0x222   : > { %645 = vsyncadd (!%p495_p3), %s365_s18, 4294967168  ;;  %s19_s17 = sadd.s32 1, %s668_s17   ;;  %s904_s12 = smov %s652_s13 }
 0x223   : > { %p16_p6 = scmp.ge.s32.totalorder %s19_s17, 4   ;;  %s905_s13 = smov %s656_s14 }
 0x224   : > { %s906_s14 = smov %s751_s26  ;;  %s907_s15 = smov %s664_s16 }
 0x225   : > { %s908_s16 = smov %s910_s20  ;;  %18 = sbr.rel (!%p16_p6) target bundleno = 6 (0x6), region = 83 }
 0x22c   :  { %370 = vsyncpa [#allocation3], 1 }
 0x22d   :  { %372 = vsyncpa [#allocation3 + $0x1], 1 }
 0x22e   :  { %373 = vsyncpa [#allocation4], 1 }
 0x22f   :  { %375 = vsyncpa [#allocation4 + $0x1], 1 }

</bundles_post_ra>
